<compile_context>
chip_gen: v7x
topology: tpu7x:2x2x1
jax: 0.10.0
libtpu: 0.0.40
codegen_flags: <defaults>
</compile_context>

<pallas_src>
import functools

import jax
import jax.numpy as jnp
from jax import lax
from jax.experimental import pallas as pl
from jax.experimental.pallas import tpu as pltpu

_LANE = 128


def _cdiv(a, b):
    return -(-a // b)


def _round_up(v, m):
    return _cdiv(v, m) * m


def _sublane_granule(dtype):
    # Second-minor packing granule: f32 -> 8, bf16/f16 -> 16, int8/fp8 -> 32.
    return 32 // jnp.dtype(dtype).itemsize


def _vmem_budget_bytes():
    """Generation-aware budget for one block's VMEM working set."""
    try:
        cap = pltpu.get_tpu_info().vmem_capacity_bytes
    except Exception:
        cap = 128 << 20
    try:
        kind = jax.devices()[0].device_kind.lower()
    except Exception:
        kind = ""
    if cap <= (64 << 20):
        # v7x: only 64 MiB VMEM per core -> cap total usage well below that.
        return 40 << 20
    if "v5" in kind:
        # v5e: default scoped VMEM is 16 MiB; stay safely under it.
        return 13 << 20
    if "v6" in kind or "v7" in kind:
        # v6e: 128 MiB physical, raise toward ~26 MiB blocks.
        return 26 << 20
    # Unknown generation: conservative (fits the smallest default scoped VMEM).
    return 13 << 20


def _choose_tiles(batch, channels, length, dtype, lane_tile=None):
    """Pick (TB, TL, n_l, L_pad) so TB*C_pad*TL fits the VMEM budget."""
    itemsize = jnp.dtype(dtype).itemsize
    c_pad = _round_up(channels, _sublane_granule(dtype))
    budget = _vmem_budget_bytes()
    # Double-buffered in + out (2x each) plus ~3 f32 temporaries per element,
    # all counted at the sublane-padded channel count.
    per_elem = 4 * itemsize + 3 * 4
    max_elems = max(budget // per_elem, c_pad * _LANE)

    l_pad128 = _round_up(length, _LANE)

    if lane_tile is not None:
        if lane_tile <= 0 or lane_tile % _LANE != 0:
            raise ValueError("lane_tile must be a positive multiple of 128")
        tl = min(lane_tile, l_pad128)
        n_l = _cdiv(l_pad128, tl)
    else:
        # Largest 128-multiple lane tile (at TB=1) fitting the budget, then
        # balance it across the minimal number of L tiles (padding to a full
        # tile instead of collapsing to TL=128 when L_pad factors awkwardly).
        lane_cap = max((max_elems // c_pad) // _LANE, 1) * _LANE
        lane_cap = min(lane_cap, l_pad128)
        n_l = _cdiv(l_pad128, lane_cap)
        tl = _round_up(_cdiv(l_pad128, n_l), _LANE)

    # Grow the leading batch-tile dimension toward the budget (divisor of B).
    # No early stop at "8 sublanes": keep growing until the VMEM budget binds.
    max_tb = max(max_elems // (c_pad * tl), 1)
    tb = 1
    for cand in range(1, batch + 1):
        if cand > max_tb:
            break
        if batch % cand == 0:
            tb = cand

    # Keep >= 2 grid steps whenever possible so both v7x TensorCores get work.
    if (batch // tb) * n_l < 2:
        if lane_tile is None and l_pad128 >= 2 * _LANE:
            n_l = 2
            tl = _round_up(_cdiv(l_pad128, n_l), _LANE)
        elif tb > 1:
            tb = max(d for d in range(1, tb) if batch % d == 0)

    l_pad = n_l * tl
    return tb, tl, n_l, l_pad


def _layernorm_kernel(eps, inv_c, x_ref, g_ref, o_ref):
    # x_ref: (TB, C, TL), g_ref: (1, C, 1), o_ref: (TB, C, TL)
    x = x_ref[...].astype(jnp.float32)
    # Two-pass centered variance (numerically safe; re-reads come from
    # VMEM/vregs, not HBM, so they hide under the DMA in this HBM-bound op).
    mean = jnp.sum(x, axis=1, keepdims=True) * inv_c          # (TB, 1, TL)
    d = x - mean
    var = jnp.sum(d * d, axis=1, keepdims=True) * inv_c       # unbiased=False
    inv = lax.rsqrt(var + eps)
    g = g_ref[...].astype(jnp.float32)                        # (1, C, 1)
    o_ref[...] = (d * inv * g).astype(o_ref.dtype)


def layer_norm(x, g, *, lane_tile=None):
    """x: (B, C, L); g: (1, C, 1). Returns (B, C, L), same dtype as x."""
    B, C, L = x.shape
    # Matches the PyTorch module: 1e-5 for float32 inputs, else 1e-3.
    eps = 1e-5 if x.dtype == jnp.float32 else 1e-3
    itemsize = jnp.dtype(x.dtype).itemsize

    TB, TL, n_l, L_pad = _choose_tiles(B, C, L, x.dtype, lane_tile)

    x_p = x if L_pad == L else jnp.pad(x, ((0, 0), (0, 0), (0, L_pad - L)))

    grid = (B // TB, n_l)
    kernel = functools.partial(_layernorm_kernel, float(eps), 1.0 / float(C))

    # Leave headroom above the block budget; stays under v7x's 64 MiB VMEM.
    vmem_limit = int(min(_vmem_budget_bytes() + (8 << 20), 60 << 20))

    # Pure HBM-bound op: read x + write y (+ tiny g); ~7 flops/element.
    cost = pl.CostEstimate(
        flops=7 * B * C * L_pad,
        transcendentals=B * L_pad,
        bytes_accessed=2 * B * C * L_pad * itemsize
        + g.size * jnp.dtype(g.dtype).itemsize,
    )

    out = pl.pallas_call(
        kernel,
        out_shape=jax.ShapeDtypeStruct((B, C, L_pad), x.dtype),
        grid=grid,
        in_specs=[
            pl.BlockSpec((TB, C, TL), lambda b, l: (b, 0, l)),
            pl.BlockSpec((1, C, 1), lambda b, l: (0, 0, 0)),   # g: constant block
        ],
        out_specs=pl.BlockSpec((TB, C, TL), lambda b, l: (b, 0, l)),
        compiler_params=pltpu.CompilerParams(
            dimension_semantics=("parallel", "parallel"),
            vmem_limit_bytes=vmem_limit,
        ),
        cost_estimate=cost,
    )(x_p, g)

    if L_pad != L:
        out = out[:, :, :L]
    return out


def _reference(x, g):
    eps = 1e-5 if x.dtype == jnp.float32 else 1e-3
    xf = x.astype(jnp.float32)
    mean = jnp.mean(xf, axis=1, keepdims=True)
    var = jnp.mean((xf - mean) ** 2, axis=1, keepdims=True)
    y = (xf - mean) * lax.rsqrt(var + eps) * g.astype(jnp.float32)
    return y.astype(x.dtype)


if __name__ == "__main__":
    key = jax.random.PRNGKey(0)
    k1, k2 = jax.random.split(key)

    # Small shapes consistent with the module's (B, C, L) layout.
    B, C, L = 2, 4, 16
    x = jax.random.normal(k1, (B, C, L), dtype=jnp.float32)
    g = jnp.ones((1, C, 1), dtype=jnp.float32)   # nn.Parameter(torch.ones(1, dim, 1))

    out = layer_norm(x, g)
    jax.block_until_ready(out)
    assert out.shape == (B, C, L)
    assert jnp.allclose(out, _reference(x, g), atol=1e-5, rtol=1e-5), "mismatch"

    # Non-128-aligned L with a manual lane_tile override: L is padded up to a
    # whole number of tiles, so no tail output is silently dropped.
    B2, C2, L2 = 3, 4, 200
    x2 = jax.random.normal(k2, (B2, C2, L2), dtype=jnp.float32)
    g2 = jnp.ones((1, C2, 1), dtype=jnp.float32)
    out2 = layer_norm(x2, g2, lane_tile=128)
    jax.block_until_ready(out2)
    assert jnp.allclose(out2, _reference(x2, g2), atol=1e-5, rtol=1e-5), "mismatch"

    print("KERNEL_OK")
</pallas_src>

<mosaic_0001>
module attributes {stable_mosaic.version = 11 : i64} {
  func.func @_layernorm_kernel(%arg0: i32, %arg1: i32, %arg2: memref<1x4x128xf32, #tpu.memory_space<vmem>>, %arg3: memref<1x4x1xf32, #tpu.memory_space<vmem>>, %arg4: memref<1x4x128xf32, #tpu.memory_space<vmem>>) attributes {dimension_semantics = [#tpu.dimension_semantics<parallel>, #tpu.dimension_semantics<parallel>], iteration_bounds = array<i64: 2, 1>, scalar_prefetch = 0 : i64, scratch_operands = 0 : i64, tpu.core_type = #tpu.core_type<tc>, window_params = [{transform_indices = @transform_0, window_bounds = array<i64: 1, 4, 128>}, {pipeline_mode = #tpu.pipeline_mode<synchronous>, transform_indices = @transform_1, window_bounds = array<i64: 1, 4, 1>}, {transform_indices = @transform_2, window_bounds = array<i64: 1, 4, 128>}]} {
    %c0 = arith.constant 0 : index
    %c0_0 = arith.constant 0 : index
    %c0_1 = arith.constant 0 : index
    %0 = vector.load %arg2[%c0, %c0_0, %c0_1] : memref<1x4x128xf32, #tpu.memory_space<vmem>>, vector<1x4x128xf32>
    %cst = arith.constant dense<0.000000e+00> : vector<1x128xf32>
    %1 = vector.multi_reduction <add>, %0, %cst [1] : vector<1x4x128xf32> to vector<1x128xf32>
    %2 = vector.shape_cast %1 : vector<1x128xf32> to vector<1x1x128xf32>
    %cst_2 = arith.constant 2.500000e-01 : f32
    %3 = vector.broadcast %cst_2 : f32 to vector<1x1x128xf32>
    %4 = arith.mulf %2, %3 : vector<1x1x128xf32>
    %5 = vector.broadcast %4 : vector<1x1x128xf32> to vector<1x4x128xf32>
    %6 = arith.subf %0, %5 : vector<1x4x128xf32>
    %7 = arith.mulf %6, %6 : vector<1x4x128xf32>
    %cst_3 = arith.constant dense<0.000000e+00> : vector<1x128xf32>
    %8 = vector.multi_reduction <add>, %7, %cst_3 [1] : vector<1x4x128xf32> to vector<1x128xf32>
    %9 = vector.shape_cast %8 : vector<1x128xf32> to vector<1x1x128xf32>
    %cst_4 = arith.constant 2.500000e-01 : f32
    %10 = vector.broadcast %cst_4 : f32 to vector<1x1x128xf32>
    %11 = arith.mulf %9, %10 : vector<1x1x128xf32>
    %cst_5 = arith.constant 9.99999974E-6 : f32
    %12 = vector.broadcast %cst_5 : f32 to vector<1x1x128xf32>
    %13 = arith.addf %11, %12 : vector<1x1x128xf32>
    %14 = math.rsqrt %13 : vector<1x1x128xf32>
    %c0_6 = arith.constant 0 : index
    %c0_7 = arith.constant 0 : index
    %c0_8 = arith.constant 0 : index
    %15 = vector.load %arg3[%c0_6, %c0_7, %c0_8] : memref<1x4x1xf32, #tpu.memory_space<vmem>>, vector<1x4x1xf32>
    %16 = vector.broadcast %14 : vector<1x1x128xf32> to vector<1x4x128xf32>
    %17 = arith.mulf %6, %16 : vector<1x4x128xf32>
    %18 = vector.broadcast %15 : vector<1x4x1xf32> to vector<1x4x128xf32>
    %19 = arith.mulf %17, %18 : vector<1x4x128xf32>
    %c0_9 = arith.constant 0 : index
    %c0_10 = arith.constant 0 : index
    %c0_11 = arith.constant 0 : index
    %20 = vector.load %arg4[%c0_9, %c0_10, %c0_11] : memref<1x4x128xf32, #tpu.memory_space<vmem>>, vector<1x4x128xf32>
    tpu.vector_store %arg4[%c0_9, %c0_10, %c0_11], %19 {strides = array<i32>} : memref<1x4x128xf32, #tpu.memory_space<vmem>>, vector<1x4x128xf32>,
    return
  }
  func.func @transform_0(%arg0: i32, %arg1: i32) -> (i32, i32, i32) {
    %c0_i32 = arith.constant 0 : i32
    %c0_i32_0 = arith.constant 0 : i32
    return %arg0, %c0_i32, %arg1 : i32, i32, i32
  }
  func.func @transform_1(%arg0: i32, %arg1: i32) -> (i32, i32, i32) {
    %c0_i32 = arith.constant 0 : i32
    %c0_i32_0 = arith.constant 0 : i32
    %c0_i32_1 = arith.constant 0 : i32
    %c0_i32_2 = arith.constant 0 : i32
    return %c0_i32, %c0_i32_0, %c0_i32_1 : i32, i32, i32
  }
  func.func @transform_2(%arg0: i32, %arg1: i32) -> (i32, i32, i32) {
    %c0_i32 = arith.constant 0 : i32
    %c0_i32_0 = arith.constant 0 : i32
    return %arg0, %c0_i32, %arg1 : i32, i32, i32
  }
}

</mosaic_0001>

<bundles_post_ra>
// kernel: tpu_custom_call.1
= control target key start
LH: loop header
LB: loop body
LE: loop exit
PB: predicated region body
PF: predicated region fallthrough
CT: control target
= control target key end

     0   :  { %7 = vsyncpa [#allocation3], 0  ;;  %s692_s0 = inlined_call_operand.hbm [shape: f32[2,4,128], index: 0, kind: input, shape index: {}]   ;;  %s693_s1 = inlined_call_operand.vmem [shape: f32[1,4,1], index: 1, kind: input, shape index: {}]   ;;  %s694_s2 = inlined_call_operand.hbm [shape: f32[2,4,128], index: 2, kind: output, shape index: {}]  }
   0x1   :  { %9 = vsyncpa [#allocation3 + $0x1], 0 }
   0x2   :  { %10 = vsyncpa [#allocation4], 0 }
   0x3   :  { %12 = vsyncpa [#allocation4 + $0x1], 0  ;;  %s513_s9 = smov 0   ;;  %s515_s10 = smov 0  }
   0x4   :  { %s517_s11 = smov 0   ;;  %s519_s12 = smov 0  }
   0x5   :  { %s521_s13 = smov 0   ;;  %s523_s14 = smov 0  }
   0x6 LB: > { %s302_s15 = sadd.s32 4294967295, %s493_s14   ;;  %s303_s16 = sadd.s32 4294967294, %s493_s14   ;;  %s493_s14 = sphi %s523_s14, %s18_s14   ;;  %s489_s13 = sphi %s521_s13, %s710_s13   ;;  %s485_s12 = sphi %s519_s12, %s709_s12   ;;  %s481_s11 = sphi %s517_s11, %s708_s11   ;;  %s477_s10 = sphi %s515_s10, %s707_s10   ;;  %s473_s9 = sphi %s513_s9, %s706_s9  }
   0x7   : > { %s30_s17 = sadd.s32 1, %s489_s13  ;;  %s39_s18 = sadd.s32 1, %s481_s11 }
   0x8   : > { %p32_p0 = scmp.ge.s32.totalorder %s30_s17, 2  ;;  %p46_p1 = scmp.ne.s32.totalorder %s481_s11, %s477_s10 }
   0x9   : > { %p47_p2 = scmp.eq.s32.totalorder %s493_s14, 0  ;;  %p52_p3 = scmp.ne.s32.totalorder %s477_s10, %s473_s9 }
   0xa   : > { %s712_s17 = smov (%p32_p0, %s30_s17), 0  ;;  %p53_p5 = scmp.eq.s32.totalorder %s302_s15, 0 }
   0xb   : > { %p554_p4 = por %p47_p2, %p46_p1  ;;  %s34_s20 = ssub.s32 %s489_s13, %s712_s17 }
   0xc   : > { %p99_p6 = scmp.eq.s32.totalorder %s302_s15, 1  ;;  %p37_p7 = scmp.eq.s32.totalorder %s34_s20, 0 }
   0xd   : > { %p560_p8 = por %p53_p5, %p52_p3  ;;  %p105_p10 = scmp.eq.s32.totalorder %s303_s16, 1 }
   0xe   : > { %p564_p9 = por %p99_p6, %p46_p1  ;;  %p327_p13 = scmp.lt.s32.totalorder %s493_s14, 2 }
   0xf   : > { %s569_s23 = scalar_select %p37_p7, %s481_s11, %s39_s18  }
  0x10   : > { %s698_s22 = scalar_select %p564_p9, 1, 0 }
  0x11   : > { %p571_p11 = por %p105_p10, %p52_p3  ;;  %s128_s25 = sand.u32 1, %s481_s11  }
  0x12   : > { %s306_s26 = sshll.u32 %s128_s25, 2  ;;  %s307_s27 = sshll.u32 %s489_s13, 6 }
  0x13   : > { %s699_s24 = scalar_select %p571_p11, 1, 0 }
  0x14   : > { %s582_s30 = scalar_lea.hbm %s692_s0, %s307_s27  ;;  %s132_s3 = scalar_lea.vmem [#allocation2], %s306_s26 }
  0x15   : > { %s140_s4 = sshll.u32 %s132_s3, 4  ;;  %p588_p0 = pnand %p327_p13, %p554_p4  ;;  %s584_s4 = int_to_ptr.vmem [resolvable:$true] %s140_s4 }
  0x16   : > { %s129_s6 = scalar_lea.sflag [#allocation3], %s128_s25  ;;  %s381_s7 = scalar_lea.hbm %s582_s30, 64 }
  0x17   : > { %p382_p3 = scmp.ne.s32.totalorder %s582_s30, %s381_s7  ;;  %p383_p5 = pneg %p588_p0 }
  0x18   : > { %s386_s16 = scalar_lea.hbm %s692_s0, 128  ;;  %p387_p4 = scmp.lt.u32.totalorder %s582_s30, %s692_s0 }
  0x19   : > { %p384_p6 = pnand %p383_p5, %p382_p3  ;;  %p388_p10 = scmp.lt.u32.totalorder %s386_s16, %s381_s7 }
  0x1a   : > { %p390_p12 = scmp.lt.u32.totalorder %s381_s7, %s582_s30 }
  0x1b   : > { %p385_p7 = pneg %p384_p6  ;;  %p389_p13 = por %p388_p10, %p387_p4 }
  0x1d   : > { %p391_p1 = por %p390_p12, %p389_p13 }
  0x1f   : > { %p392_p2 = pnand %p391_p1, %p385_p7 }
  0x21   : > { %395 = shalt.err (!%p392_p2)
}
  0x22   : > { %s396_s20 = scalar_lea.vmem %s584_s4, 64  ;;  %s495_s25 = smov [#allocation2]  }
  0x23   : > { %p397_p3 = scmp.ne.s32.totalorder %s584_s4, %s396_s20  ;;  %s401_s26 = sshll.u32 %s495_s25, 4  ;;  %s402_s26 = int_to_ptr.vmem [resolvable:$false] %s401_s26 }
  0x24   : > { %s403_s27 = scalar_lea.vmem %s402_s26, 128  ;;  %p404_p9 = scmp.lt.s32.totalorder %s584_s4, %s402_s26 }
  0x25   : > { %p399_p6 = pnand %p397_p3, %p383_p5  ;;  %p405_p4 = scmp.lt.s32.totalorder %s403_s27, %s396_s20 }
  0x27   : > { %p400_p11 = pneg %p399_p6  ;;  %p406_p10 = por %p405_p4, %p404_p9 }
  0x29   : > { %p407_p12 = pnand %p406_p10, %p400_p11 }
  0x2b   : > { %410 = shalt.err (!%p407_p12)
}
  0x2c   : > { %322 = dma.hbm_to_vmem [thread:$0]  (!%p588_p0), %s582_s30, 64, %s584_s4, %s129_s6  }
  0x2d   : > { %p701_p1 = scmp.lt.s32.totalorder %s493_s14, 3  ;;  %p702_p2 = scmp.ge.s32.totalorder %s493_s14, 1 }
  0x2f   : > { %p146_p5 = pnand %p702_p2, %p701_p1 }
  0x30   : > { %s624_s28 = sand.u32 (!%p146_p5), 1, %s477_s10  }
  0x31   : > { %149 = sbr.rel (%p146_p5) target bundleno = 203 (0xcb), region = 28  ;;  %s309_s29 = sshll.u32 (!%p146_p5), %s624_s28, 2 }
  0x32   : > { %s152_s3 = scalar_lea.sflag (!%p146_p5), [#allocation3], %s624_s28  ;;  %s155_s5 = scalar_lea.vmem (!%p146_p5), [#allocation2], %s309_s29 }
  0x38   : > { %464 = dma.done.wait (%p560_p8), %s152_s3, 64  }
  0x39   : > { %466 = vsyncadd (%p560_p8), %s152_s3, 4294967232  ;;  %v496_v0 = vmov 0   ;;  %v198_v1 = vld [vmem:[%s693_s1] sm:$0xf]  ;;  %vm177_vm0 = vcmask 1043456   ;;  %s312_s21 = sshll.u32 %s485_s12, 6 }
  0x3a   : > { %378 = vset.pattern.permute.xlu0 %v496_v0  ;;  %v176_v2 = vld [vmem:[%s155_s5] sm:$0xf]  ;;  %s175_s6 = scalar_lea.vmem [#allocation5], %s309_s29  ;;  %s643_s16 = scalar_lea.hbm %s694_s2, %s312_s21 }
  0x3b   : > { %202 = vperm.xlu0 %378, %v198_v1   ;;  %v178_v3 = vsel %vm177_vm0, %v176_v2, 0.0  ;;  %s222_s7 = sshll.u32 %s175_s6, 4  ;;  %s208_s18 = scalar_lea.sflag [#allocation4], %s624_s28  ;;  %s645_s7 = int_to_ptr.vmem [resolvable:$true] %s222_s7 }
  0x3c   : > { %v179_v4 = vrot.slane %v178_v3, 4  ;;  %s411_s19 = scalar_lea.vmem %s645_s7, 64  ;;  %p703_p9 = scmp.ne.s32.totalorder %s698_s22, 0 }
  0x3d   : > { %p412_p8 = scmp.ne.s32.totalorder %s645_s7, %s411_s19  ;;  %s497_s12 = smov [#allocation5]  }
  0x3e   : > { %v180_v5 = vadd.f32 %v179_v4, %v178_v3  ;;  %s415_s20 = sshll.u32 %s497_s12, 4  ;;  %s416_s20 = int_to_ptr.vmem [resolvable:$false] %s415_s20 }
  0x3f   : > { %p413_p11 = pnand %p412_p8, %p703_p9  ;;  %s417_s25 = scalar_lea.vmem %s416_s20, 128 }
  0x40   : > { %v181_v6 = vrot.slane %v180_v5, 2  ;;  %p418_p7 = scmp.lt.s32.totalorder %s645_s7, %s416_s20  ;;  %p419_p13 = scmp.lt.s32.totalorder %s417_s25, %s411_s19 }
  0x41   : > { %p414_p0 = pneg %p413_p11 }
  0x42   : > { %v182_v7 = vadd.f32 %v181_v6, %v180_v5  ;;  %p420_p3 = por %p419_p13, %p418_p7 }
  0x44   : > { %v183_v8 = vrot.slane %v182_v7, 1  ;;  %p421_p6 = pnand %p420_p3, %p414_p0 }
  0x46   : > { %v184_v9 = vadd.f32 %v183_v8, %v182_v7 }
  0x48   : > { %v185_v10 = vmul.f32 0.25, %v184_v9 }
  0x4a   : > { %v186_v11 = vsub.f32 %v176_v2, %v185_v10 }
  0x4c   : > { %v187_v12 = vmul.f32 %v186_v11, %v186_v11 }
  0x4e   : > { %v188_v13 = vsel %vm177_vm0, %v187_v12, 0.0 }
  0x4f   : > { %v189_v14 = vrot.slane %v188_v13, 4 }
  0x51   : > { %v190_v15 = vadd.f32 %v189_v14, %v188_v13 }
  0x53   : > { %v191_v16 = vrot.slane %v190_v15, 2 }
  0x55   : > { %v192_v17 = vadd.f32 %v191_v16, %v190_v15 }
  0x57   : > { %v193_v18 = vrot.slane %v192_v17, 1 }
  0x59   : > { %v194_v19 = vadd.f32 %v193_v18, %v192_v17 }
  0x5b   : > { %v195_v20 = vmul.f32 0.25, %v194_v19 }
  0x5d   : > { %v196_v21 = vadd.f32 1e-05, %v195_v20 }
  0x5f   : > { %379 = vrsqrt.f32 %v196_v21 }
  0x69   : > { %v380_v22 = vpop.eup %379 }
  0x6a   : > { %v199_v23 = vmul.f32 %v380_v22, %v186_v11 }
  0xba   : > { %v203_v24 = vpop.permute.xlu0 %202 }
  0xbb   : > { %v205_v25 = vmul.f32 %v203_v24, %v199_v23 }
  0xbd   : > { %206 = vst [vmem:[%s175_s6] sm:$0xf] %v205_v25 }
  0xbe   : > { %424 = shalt.err (!%p421_p6)
}
  0xbf   : > { %s425_s26 = scalar_lea.hbm %s643_s16, 64  ;;  %s429_s29 = scalar_lea.hbm %s694_s2, 128 }
  0xc0   : > { %p426_p4 = scmp.ne.s32.totalorder %s643_s16, %s425_s26  ;;  %p430_p1 = scmp.lt.u32.totalorder %s643_s16, %s694_s2 }
  0xc1   : > { %p431_p2 = scmp.lt.u32.totalorder %s429_s29, %s425_s26  ;;  %p433_p8 = scmp.lt.u32.totalorder %s425_s26, %s643_s16 }
  0xc2   : > { %p427_p10 = pnand %p426_p4, %p703_p9 }
  0xc3   : > { %p432_p5 = por %p431_p2, %p430_p1 }
  0xc4   : > { %p428_p12 = pneg %p427_p10 }
  0xc5   : > { %p434_p11 = por %p433_p8, %p432_p5 }
  0xc7   : > { %p435_p0 = pnand %p434_p11, %p428_p12 }
  0xc9   : > { %438 = shalt.err (!%p435_p0)
}
  0xca   : > { %317 = dma.vmem_to_hbm [thread:$0]  (%p703_p9), %s645_s7, 64, %s643_s16, %s208_s18  }
  0xcb PF: > { %s234_s30 = sand.u32 1, %s473_s9   ;;  %p704_p7 = scmp.ne.s32.totalorder %s699_s24, 0 }
  0xcc   : > { %p705_p13 = scmp.ge.s32.totalorder %s493_s14, 2  ;;  %s235_s4 = scalar_lea.sflag [#allocation4], %s234_s30 }
  0xce   : > { %p324_p3 = pnand %p705_p13, %p704_p7 }
  0xd0   : > { %468 = dma.done.wait (!%p324_p3), %s235_s4, 64  }
  0xd1   : > { %470 = vsyncadd (!%p324_p3), %s235_s4, 4294967232  ;;  %s18_s14 = sadd.s32 1, %s493_s14   ;;  %s706_s9 = smov %s477_s10 }
  0xd2   : > { %p15_p6 = scmp.ge.s32.totalorder %s18_s14, 4   ;;  %s707_s10 = smov %s481_s11 }
  0xd3   : > { %s708_s11 = smov %s569_s23  ;;  %s709_s12 = smov %s489_s13 }
  0xd4   : > { %s710_s13 = smov %s712_s17  ;;  %17 = sbr.rel (!%p15_p6) target bundleno = 6 (0x6), region = 73 }
  0xdb   :  { %240 = vsyncpa [#allocation3], 1 }
  0xdc   :  { %242 = vsyncpa [#allocation3 + $0x1], 1 }
  0xdd   :  { %243 = vsyncpa [#allocation4], 1 }
  0xde   :  { %245 = vsyncpa [#allocation4 + $0x1], 1 }

</bundles_post_ra>
